<compile_context>
chip_gen: v7x
topology: tpu7x:2x2x1
jax: 0.10.0
libtpu: 0.0.40
codegen_flags: <defaults>
</compile_context>

<pallas_src>
import functools

import jax
import jax.numpy as jnp
from jax.experimental import pallas as pl
from jax.experimental.pallas import tpu as pltpu


# ----------------------------------------------------------------------------
# Budgets / helpers
# ----------------------------------------------------------------------------

def _round_up(x, m):
    return -(-x // m) * m


def _round_down(x, m):
    return (x // m) * m


def _physical_vmem_bytes():
    try:
        info = pltpu.get_tpu_info()
        v = getattr(info, "vmem_capacity_bytes", None)
        if v:
            return int(v)
    except Exception:
        pass
    return 64 * 1024 * 1024  # conservative default: v7x per-TensorCore VMEM


_PHYS_VMEM = _physical_vmem_bytes()
# Fused kernel: in + out blocks are double-buffered => ~4x this must fit VMEM.
_FUSED_BLOCK_BUDGET = max(2 << 20, min(_PHYS_VMEM // 8, 16 << 20))
# Streaming fallback block target (bigger on 128 MiB-VMEM chips).
_STREAM_BLOCK_BYTES = (4 << 20) if _PHYS_VMEM >= (128 << 20) else (2 << 20)
_VMEM_LIMIT = int(max(32 << 20, min(_PHYS_VMEM - (16 << 20), 100 << 20)))


def _compiler_params(dims):
    return pltpu.CompilerParams(dimension_semantics=dims,
                                vmem_limit_bytes=_VMEM_LIMIT)


# ----------------------------------------------------------------------------
# Fused single-pass kernels (stats + normalize, X read from HBM exactly once)
# ----------------------------------------------------------------------------

def _fused_nchw_kernel(x_ref, g_ref, b_ref, y_ref, mean_ref, var_ref, *,
                       inv_count, eps):
    x = x_ref[...].astype(jnp.float32)                               # (N, ct, L)
    s = jnp.sum(jnp.sum(x, axis=2, keepdims=True), axis=0, keepdims=True)
    mean = s * inv_count                                             # (1, ct, 1)
    xc = x - mean
    v = jnp.sum(jnp.sum(xc * xc, axis=2, keepdims=True), axis=0, keepdims=True)
    var = v * inv_count
    scale = g_ref[...].astype(jnp.float32) * jax.lax.rsqrt(var + eps)
    y_ref[...] = (xc * scale + b_ref[...].astype(jnp.float32)).astype(y_ref.dtype)
    mean_ref[...] = mean
    var_ref[...] = var


def _fused_nchw(x3, gamma3, beta3, c_tile, eps):
    N, C, L = x3.shape
    kern = functools.partial(_fused_nchw_kernel,
                             inv_count=1.0 / float(N * L), eps=eps)
    return pl.pallas_call(
        kern,
        out_shape=(jax.ShapeDtypeStruct((N, C, L), x3.dtype),
                   jax.ShapeDtypeStruct((1, C, 1), jnp.float32),
                   jax.ShapeDtypeStruct((1, C, 1), jnp.float32)),
        grid=(pl.cdiv(C, c_tile),),
        in_specs=[pl.BlockSpec((N, c_tile, L), lambda c: (0, c, 0)),
                  pl.BlockSpec((1, c_tile, 1), lambda c: (0, c, 0)),
                  pl.BlockSpec((1, c_tile, 1), lambda c: (0, c, 0))],
        out_specs=(pl.BlockSpec((N, c_tile, L), lambda c: (0, c, 0)),
                   pl.BlockSpec((1, c_tile, 1), lambda c: (0, c, 0)),
                   pl.BlockSpec((1, c_tile, 1), lambda c: (0, c, 0))),
        compiler_params=_compiler_params(("parallel",)),
    )(x3, gamma3, beta3)


def _fused_nc_kernel(x_ref, g_ref, b_ref, y_ref, mean_ref, var_ref, *,
                     inv_count, eps):
    x = x_ref[...].astype(jnp.float32)                               # (N, ct)
    mean = jnp.sum(x, axis=0, keepdims=True) * inv_count             # (1, ct)
    xc = x - mean
    var = jnp.sum(xc * xc, axis=0, keepdims=True) * inv_count
    scale = g_ref[...].astype(jnp.float32) * jax.lax.rsqrt(var + eps)
    y_ref[...] = (xc * scale + b_ref[...].astype(jnp.float32)).astype(y_ref.dtype)
    mean_ref[...] = mean
    var_ref[...] = var


def _fused_nc(x, gamma2, beta2, c_tile, eps):
    N, C = x.shape
    kern = functools.partial(_fused_nc_kernel, inv_count=1.0 / float(N), eps=eps)
    return pl.pallas_call(
        kern,
        out_shape=(jax.ShapeDtypeStruct((N, C), x.dtype),
                   jax.ShapeDtypeStruct((1, C), jnp.float32),
                   jax.ShapeDtypeStruct((1, C), jnp.float32)),
        grid=(pl.cdiv(C, c_tile),),
        in_specs=[pl.BlockSpec((N, c_tile), lambda c: (0, c)),
                  pl.BlockSpec((1, c_tile), lambda c: (0, c)),
                  pl.BlockSpec((1, c_tile), lambda c: (0, c))],
        out_specs=(pl.BlockSpec((N, c_tile), lambda c: (0, c)),
                   pl.BlockSpec((1, c_tile), lambda c: (0, c)),
                   pl.BlockSpec((1, c_tile), lambda c: (0, c))),
        compiler_params=_compiler_params(("parallel",)),
    )(x, gamma2, beta2)


# ----------------------------------------------------------------------------
# Streaming fallback: stats pass (rows = (n, c) pairs, lanes = H*W)
# ----------------------------------------------------------------------------

def _row_stats_kernel(x_ref, sum_ref, sq_ref, *, L, l_tile, lane_w):
    li = pl.program_id(1)

    @pl.when(li == 0)
    def _():
        sum_ref[...] = jnp.zeros_like(sum_ref)
        sq_ref[...] = jnp.zeros_like(sq_ref)

    x = x_ref[...].astype(jnp.float32)                               # (rt, lt)
    if L % l_tile != 0:                                              # mask ragged tail
        col = jax.lax.broadcasted_iota(jnp.int32, x.shape, 1) + li * l_tile
        x = jnp.where(col < L, x, 0.0)

    # Lane-parallel partial sums: pure VALU adds, no per-step cross-lane reduce.
    ps = jnp.zeros((x.shape[0], lane_w), jnp.float32)
    pq = jnp.zeros((x.shape[0], lane_w), jnp.float32)
    for i in range(l_tile // lane_w):
        c = x[:, i * lane_w:(i + 1) * lane_w]
        ps = ps + c
        pq = pq + c * c
    sum_ref[...] += ps
    sq_ref[...] += pq


def _row_stats(x2, r_tile, l_tile):
    R, L = x2.shape
    lane_w = min(l_tile, 128)
    kern = functools.partial(_row_stats_kernel, L=L, l_tile=l_tile, lane_w=lane_w)
    return pl.pallas_call(
        kern,
        out_shape=(jax.ShapeDtypeStruct((R, lane_w), jnp.float32),
                   jax.ShapeDtypeStruct((R, lane_w), jnp.float32)),
        grid=(pl.cdiv(R, r_tile), pl.cdiv(L, l_tile)),
        in_specs=[pl.BlockSpec((r_tile, l_tile), lambda r, l: (r, l))],
        out_specs=(pl.BlockSpec((r_tile, lane_w), lambda r, l: (r, 0)),
                   pl.BlockSpec((r_tile, lane_w), lambda r, l: (r, 0))),
        compiler_params=_compiler_params(("parallel", "arbitrary")),
    )(x2)


# ----------------------------------------------------------------------------
# Streaming fallback: stats pass (2-D NC, lanes = channels)
# ----------------------------------------------------------------------------

def _col_stats_kernel(x_ref, sum_ref, sq_ref, *, N, n_tile):
    ni = pl.program_id(1)

    @pl.when(ni == 0)
    def _():
        sum_ref[...] = jnp.zeros_like(sum_ref)
        sq_ref[...] = jnp.zeros_like(sq_ref)

    x = x_ref[...].astype(jnp.float32)                               # (nt, ct)
    if N % n_tile != 0:                                              # mask ragged tail
        row = jax.lax.broadcasted_iota(jnp.int32, x.shape, 0) + ni * n_tile
        x = jnp.where(row < N, x, 0.0)
    sum_ref[...] += jnp.sum(x, axis=0, keepdims=True)
    sq_ref[...] += jnp.sum(x * x, axis=0, keepdims=True)


def _col_stats(x, n_tile, c_tile):
    N, C = x.shape
    kern = functools.partial(_col_stats_kernel, N=N, n_tile=n_tile)
    return pl.pallas_call(
        kern,
        out_shape=(jax.ShapeDtypeStruct((1, C), jnp.float32),
                   jax.ShapeDtypeStruct((1, C), jnp.float32)),
        grid=(pl.cdiv(C, c_tile), pl.cdiv(N, n_tile)),
        in_specs=[pl.BlockSpec((n_tile, c_tile), lambda c, n: (n, c))],
        out_specs=(pl.BlockSpec((1, c_tile), lambda c, n: (0, c)),
                   pl.BlockSpec((1, c_tile), lambda c, n: (0, c))),
        compiler_params=_compiler_params(("parallel", "arbitrary")),
    )(x)


# ----------------------------------------------------------------------------
# Affine pass y = x * scale + shift (shared by fallback / eval paths)
# ----------------------------------------------------------------------------

def _affine_kernel(x_ref, scale_ref, shift_ref, y_ref):
    y = x_ref[...].astype(jnp.float32) * scale_ref[...] + shift_ref[...]
    y_ref[...] = y.astype(y_ref.dtype)


def _affine_rows(x2, scale_row, shift_row, r_tile, l_tile):
    R, L = x2.shape
    return pl.pallas_call(
        _affine_kernel,
        out_shape=jax.ShapeDtypeStruct((R, L), x2.dtype),
        grid=(pl.cdiv(R, r_tile), pl.cdiv(L, l_tile)),
        in_specs=[pl.BlockSpec((r_tile, l_tile), lambda r, l: (r, l)),
                  pl.BlockSpec((r_tile, 1), lambda r, l: (r, 0)),
                  pl.BlockSpec((r_tile, 1), lambda r, l: (r, 0))],
        out_specs=pl.BlockSpec((r_tile, l_tile), lambda r, l: (r, l)),
        compiler_params=_compiler_params(("parallel", "parallel")),
    )(x2, scale_row, shift_row)


def _affine_cols(x, scale, shift, n_tile, c_tile):
    N, C = x.shape
    return pl.pallas_call(
        _affine_kernel,
        out_shape=jax.ShapeDtypeStruct((N, C), x.dtype),
        grid=(pl.cdiv(N, n_tile), pl.cdiv(C, c_tile)),
        in_specs=[pl.BlockSpec((n_tile, c_tile), lambda n, c: (n, c)),
                  pl.BlockSpec((1, c_tile), lambda n, c: (0, c)),
                  pl.BlockSpec((1, c_tile), lambda n, c: (0, c))],
        out_specs=pl.BlockSpec((n_tile, c_tile), lambda n, c: (n, c)),
        compiler_params=_compiler_params(("parallel", "parallel")),
    )(x, scale, shift)


# ----------------------------------------------------------------------------
# Tile selection
# ----------------------------------------------------------------------------

def _fused_c_tile_4d(N, C, L, itemsize, budget):
    """Channel tile for the fused NCHW kernel, or None if no legal tile fits."""
    per_c = N * L * itemsize
    if C <= 8:
        return C if C * per_c <= budget else None
    max_fit = _round_down(budget // per_c, 8)
    if max_fit < 8:
        return None
    if max_fit >= C:
        max_fit = _round_down(C, 8)
    # Cap so the grid has >=2 steps (v7x megacore gets both cores busy).
    cap = max(8, _round_down(_round_up(C, 8) // 2, 8))
    t = min(max_fit, cap)
    # Prefer more grid steps while keeping blocks >= ~1 MiB.
    while t > 8 and pl.cdiv(C, t) < 8 and (t - 8) * per_c >= (1 << 20):
        t -= 8
    return t


def _fused_c_tile_2d(N, C, itemsize, budget):
    per_c = N * itemsize
    if C <= 128:
        return C if C * per_c <= budget else None
    max_fit = _round_down(budget // per_c, 128)
    if max_fit < 128:
        return None
    if max_fit >= C:
        max_fit = _round_down(C, 128)
    cap = max(128, _round_down(_round_up(C, 128) // 2, 128))
    t = min(max_fit, cap)
    while t > 128 and pl.cdiv(C, t) < 8 and (t - 128) * per_c >= (1 << 20):
        t -= 128
    return t


def _stream_tiles_rows(R, L, itemsize, target_bytes):
    l_tile = L if L < 128 else min(_round_down(L, 128), 4096)
    if R < 8:
        r_tile = R
    else:
        by_budget = _round_down(max(target_bytes // (l_tile * itemsize), 8), 8)
        r_tile = max(8, min(_round_down(R, 8), by_budget))
    return r_tile, l_tile


def _stream_tiles_cols(N, C, itemsize, target_bytes):
    c_tile = C if C < 128 else min(_round_down(C, 128), 2048)
    if C >= 256:
        c_tile = min(c_tile, max(128, _round_down(C // 2, 128)))  # >=2 parallel steps
    if N < 8:
        n_tile = N
    else:
        by_budget = _round_down(max(target_bytes // (c_tile * itemsize), 8), 8)
        n_tile = max(8, min(_round_down(N, 8), by_budget))
    return n_tile, c_tile


# ----------------------------------------------------------------------------
# Forward wrapper mirroring d2l `batch_norm`
# ----------------------------------------------------------------------------

def _batch_norm_impl(X, gamma, beta, moving_mean, moving_var,
                     eps, momentum, training, force_streaming=False):
    assert X.ndim in (2, 4)
    itemsize = jnp.dtype(X.dtype).itemsize

    if X.ndim == 4:
        N, C, H, W = X.shape
        L = H * W
        param_shape = (1, C, 1, 1)
        if training:
            c_tile = None if force_streaming else _fused_c_tile_4d(
                N, C, L, itemsize, _FUSED_BLOCK_BUDGET)
            if c_tile is not None:
                # Fused single pass: 1 HBM read + 1 write of X.
                x3 = X.reshape(N, C, L)                 # free reshape, no transpose
                y3, mean3, var3 = _fused_nchw(
                    x3, gamma.reshape(1, C, 1).astype(jnp.float32),
                    beta.reshape(1, C, 1).astype(jnp.float32), c_tile, eps)
                Y = y3.reshape(N, C, H, W)
                mean = mean3.reshape(C)
                var = var3.reshape(C)
            else:
                # Streaming two-pass fallback (per-channel slab exceeds VMEM).
                R = N * C
                x2 = X.reshape(R, L)
                r_tile, l_tile = _stream_tiles_rows(R, L, itemsize,
                                                    _STREAM_BLOCK_BYTES)
                psum, psq = _row_stats(x2, r_tile, l_tile)
                cnt = float(N * L)
                ch_sum = psum.sum(axis=1).reshape(N, C).sum(axis=0)  # tiny combine
                ch_sq = psq.sum(axis=1).reshape(N, C).sum(axis=0)
                mean = ch_sum / cnt
                # TODO(synk): single-pass E[x^2]-E[x]^2 loses precision when
                # |mean| >> std; acceptable for normalized activations.
                var = jnp.maximum(ch_sq / cnt - mean * mean, 0.0)
                scale = gamma.reshape(C).astype(jnp.float32) * jax.lax.rsqrt(var + eps)
                shift = beta.reshape(C).astype(jnp.float32) - mean * scale
                scale_row = jnp.broadcast_to(scale[None, :], (N, C)).reshape(R, 1)
                shift_row = jnp.broadcast_to(shift[None, :], (N, C)).reshape(R, 1)
                Y = _affine_rows(x2, scale_row, shift_row,
                                 r_tile, l_tile).reshape(N, C, H, W)
        else:
            mean = moving_mean.reshape(C).astype(jnp.float32)
            var = moving_var.reshape(C).astype(jnp.float32)
            scale = gamma.reshape(C).astype(jnp.float32) * jax.lax.rsqrt(var + eps)
            shift = beta.reshape(C).astype(jnp.float32) - mean * scale
            R = N * C
            x2 = X.reshape(R, L)
            r_tile, l_tile = _stream_tiles_rows(R, L, itemsize, _STREAM_BLOCK_BYTES)
            scale_row = jnp.broadcast_to(scale[None, :], (N, C)).reshape(R, 1)
            shift_row = jnp.broadcast_to(shift[None, :], (N, C)).reshape(R, 1)
            Y = _affine_rows(x2, scale_row, shift_row,
                             r_tile, l_tile).reshape(N, C, H, W)
    else:
        N, C = X.shape
        param_shape = (1, C)
        if training:
            c_tile = None if force_streaming else _fused_c_tile_2d(
                N, C, itemsize, _FUSED_BLOCK_BUDGET)
            if c_tile is not None:
                Y, mean2, var2 = _fused_nc(
                    X, gamma.reshape(1, C).astype(jnp.float32),
                    beta.reshape(1, C).astype(jnp.float32), c_tile, eps)
                mean = mean2.reshape(C)
                var = var2.reshape(C)
            else:
                n_tile, c_tile = _stream_tiles_cols(N, C, itemsize,
                                                    _STREAM_BLOCK_BYTES)
                csum, csq = _col_stats(X, n_tile, c_tile)
                cnt = float(N)
                mean = csum.reshape(C) / cnt
                var = jnp.maximum(csq.reshape(C) / cnt - mean * mean, 0.0)
                scale = gamma.reshape(C).astype(jnp.float32) * jax.lax.rsqrt(var + eps)
                shift = beta.reshape(C).astype(jnp.float32) - mean * scale
                Y = _affine_cols(X, scale.reshape(1, C), shift.reshape(1, C),
                                 n_tile, c_tile)
        else:
            mean = moving_mean.reshape(C).astype(jnp.float32)
            var = moving_var.reshape(C).astype(jnp.float32)
            scale = gamma.reshape(C).astype(jnp.float32) * jax.lax.rsqrt(var + eps)
            shift = beta.reshape(C).astype(jnp.float32) - mean * scale
            n_tile, c_tile = _stream_tiles_cols(N, C, itemsize, _STREAM_BLOCK_BYTES)
            Y = _affine_cols(X, scale.reshape(1, C), shift.reshape(1, C),
                             n_tile, c_tile)

    if training:
        new_mm = momentum * moving_mean + (1.0 - momentum) * mean.reshape(param_shape)
        new_mv = momentum * moving_var + (1.0 - momentum) * var.reshape(param_shape)
    else:
        new_mm, new_mv = moving_mean, moving_var
    return Y, new_mm, new_mv


batch_norm_pallas = jax.jit(
    _batch_norm_impl,
    static_argnames=("eps", "momentum", "training", "force_streaming"))


class BatchNorm:
    """JAX/Pallas port of the PyTorch `BatchNorm` module (d2l ch. 7.5)."""

    def __init__(self, num_features, num_dims):
        shape = (1, num_features) if num_dims == 2 else (1, num_features, 1, 1)
        self.gamma = jnp.ones(shape, jnp.float32)
        self.beta = jnp.zeros(shape, jnp.float32)
        self.moving_mean = jnp.zeros(shape, jnp.float32)
        self.moving_var = jnp.ones(shape, jnp.float32)

    def __call__(self, X, training=True):
        Y, self.moving_mean, self.moving_var = batch_norm_pallas(
            X, self.gamma, self.beta, self.moving_mean, self.moving_var,
            eps=1e-5, momentum=0.9, training=training, force_streaming=False)
        return Y


# ----------------------------------------------------------------------------
# Pure-JAX reference (PyTorch training-branch semantics)
# ----------------------------------------------------------------------------

def _reference(X, gamma, beta, moving_mean, moving_var, eps, momentum):
    axes = (0,) if X.ndim == 2 else (0, 2, 3)
    mean = jnp.mean(X, axis=axes, keepdims=True)
    var = jnp.mean((X - mean) ** 2, axis=axes, keepdims=True)
    X_hat = (X - mean) / jnp.sqrt(var + eps)
    Y = gamma * X_hat + beta
    return (Y,
            momentum * moving_mean + (1 - momentum) * mean,
            momentum * moving_var + (1 - momentum) * var)


if __name__ == "__main__":
    key = jax.random.PRNGKey(0)
    k1, k2, k3, k4 = jax.random.split(key, 4)

    # --- 4-D NCHW, fused single-pass path ------------------------------------
    X4 = jax.random.normal(k1, (2, 4, 16, 16), jnp.float32)
    bn4 = BatchNorm(num_features=4, num_dims=4)
    Y4 = bn4(X4)
    jax.block_until_ready(Y4)
    jax.block_until_ready(bn4.moving_mean)
    jax.block_until_ready(bn4.moving_var)

    Y4_ref, mm4_ref, mv4_ref = _reference(
        X4, jnp.ones((1, 4, 1, 1)), jnp.zeros((1, 4, 1, 1)),
        jnp.zeros((1, 4, 1, 1)), jnp.ones((1, 4, 1, 1)), 1e-5, 0.9)
    assert jnp.allclose(Y4, Y4_ref, atol=1e-4, rtol=1e-4)
    assert jnp.allclose(bn4.moving_mean, mm4_ref, atol=1e-6)
    assert jnp.allclose(bn4.moving_var, mv4_ref, atol=1e-6)

    # --- 2-D NC, fused single-pass path ---------------------------------------
    X2 = jax.random.normal(k2, (8, 32), jnp.float32)
    bn2 = BatchNorm(num_features=32, num_dims=2)
    Y2 = bn2(X2)
    jax.block_until_ready(Y2)

    Y2_ref, mm2_ref, mv2_ref = _reference(
        X2, jnp.ones((1, 32)), jnp.zeros((1, 32)),
        jnp.zeros((1, 32)), jnp.ones((1, 32)), 1e-5, 0.9)
    assert jnp.allclose(Y2, Y2_ref, atol=1e-4, rtol=1e-4)
    assert jnp.allclose(bn2.moving_mean, mm2_ref, atol=1e-6)
    assert jnp.allclose(bn2.moving_var, mv2_ref, atol=1e-6)

    # --- Streaming fallback path (forced) on non-(8,128)-aligned shapes ------
    X4b = jax.random.normal(k3, (2, 3, 14, 14), jnp.float32)
    g4b = jnp.ones((1, 3, 1, 1)); b4b = jnp.zeros((1, 3, 1, 1))
    mm4b = jnp.zeros((1, 3, 1, 1)); mv4b = jnp.ones((1, 3, 1, 1))
    Y4b, nmm4b, nmv4b = batch_norm_pallas(
        X4b, g4b, b4b, mm4b, mv4b, eps=1e-5, momentum=0.9,
        training=True, force_streaming=True)
    jax.block_until_ready(Y4b)
    Y4b_ref, mm4b_ref, mv4b_ref = _reference(X4b, g4b, b4b, mm4b, mv4b, 1e-5, 0.9)
    assert jnp.allclose(Y4b, Y4b_ref, atol=1e-4, rtol=1e-4)
    assert jnp.allclose(nmm4b, mm4b_ref, atol=1e-5)
    assert jnp.allclose(nmv4b, mv4b_ref, atol=1e-5)

    X2b = jax.random.normal(k4, (10, 20), jnp.float32)
    g2b = jnp.ones((1, 20)); b2b = jnp.zeros((1, 20))
    mm2b = jnp.zeros((1, 20)); mv2b = jnp.ones((1, 20))
    Y2b, nmm2b, nmv2b = batch_norm_pallas(
        X2b, g2b, b2b, mm2b, mv2b, eps=1e-5, momentum=0.9,
        training=True, force_streaming=True)
    jax.block_until_ready(Y2b)
    Y2b_ref, mm2b_ref, mv2b_ref = _reference(X2b, g2b, b2b, mm2b, mv2b, 1e-5, 0.9)
    assert jnp.allclose(Y2b, Y2b_ref, atol=1e-4, rtol=1e-4)
    assert jnp.allclose(nmm2b, mm2b_ref, atol=1e-5)
    assert jnp.allclose(nmv2b, mv2b_ref, atol=1e-5)

    print("KERNEL_OK")
</pallas_src>

<mosaic_0001>
module attributes {stable_mosaic.version = 11 : i64} {
  func.func @_fused_nchw_kernel(%arg0: i32, %arg1: memref<2x4x256xf32, #tpu.memory_space<vmem>>, %arg2: memref<1x4x1xf32, #tpu.memory_space<vmem>>, %arg3: memref<1x4x1xf32, #tpu.memory_space<vmem>>, %arg4: memref<2x4x256xf32, #tpu.memory_space<vmem>>, %arg5: memref<1x4x1xf32, #tpu.memory_space<vmem>>, %arg6: memref<1x4x1xf32, #tpu.memory_space<vmem>>) attributes {dimension_semantics = [#tpu.dimension_semantics<parallel>], iteration_bounds = array<i64: 1>, scalar_prefetch = 0 : i64, scratch_operands = 0 : i64, tpu.core_type = #tpu.core_type<tc>, window_params = [{transform_indices = @transform_0, window_bounds = array<i64: 2, 4, 256>}, {transform_indices = @transform_1, window_bounds = array<i64: 1, 4, 1>}, {transform_indices = @transform_2, window_bounds = array<i64: 1, 4, 1>}, {transform_indices = @transform_3, window_bounds = array<i64: 2, 4, 256>}, {transform_indices = @transform_4, window_bounds = array<i64: 1, 4, 1>}, {transform_indices = @transform_5, window_bounds = array<i64: 1, 4, 1>}]} {
    %c0 = arith.constant 0 : index
    %c0_0 = arith.constant 0 : index
    %c0_1 = arith.constant 0 : index
    %0 = vector.load %arg1[%c0, %c0_0, %c0_1] : memref<2x4x256xf32, #tpu.memory_space<vmem>>, vector<2x4x256xf32>
    %cst = arith.constant dense<0.000000e+00> : vector<2x4xf32>
    %1 = vector.multi_reduction <add>, %0, %cst [2] : vector<2x4x256xf32> to vector<2x4xf32>
    %2 = vector.shape_cast %1 : vector<2x4xf32> to vector<2x4x1xf32>
    %cst_2 = arith.constant dense<0.000000e+00> : vector<4x1xf32>
    %3 = vector.multi_reduction <add>, %2, %cst_2 [0] : vector<2x4x1xf32> to vector<4x1xf32>
    %4 = vector.shape_cast %3 : vector<4x1xf32> to vector<1x4x1xf32>
    %cst_3 = arith.constant 0.001953125 : f32
    %5 = vector.broadcast %cst_3 : f32 to vector<1x4x1xf32>
    %6 = arith.mulf %4, %5 : vector<1x4x1xf32>
    %7 = vector.broadcast %6 : vector<1x4x1xf32> to vector<2x4x256xf32>
    %8 = arith.subf %0, %7 : vector<2x4x256xf32>
    %9 = arith.mulf %8, %8 : vector<2x4x256xf32>
    %cst_4 = arith.constant dense<0.000000e+00> : vector<2x4xf32>
    %10 = vector.multi_reduction <add>, %9, %cst_4 [2] : vector<2x4x256xf32> to vector<2x4xf32>
    %11 = vector.shape_cast %10 : vector<2x4xf32> to vector<2x4x1xf32>
    %cst_5 = arith.constant dense<0.000000e+00> : vector<4x1xf32>
    %12 = vector.multi_reduction <add>, %11, %cst_5 [0] : vector<2x4x1xf32> to vector<4x1xf32>
    %13 = vector.shape_cast %12 : vector<4x1xf32> to vector<1x4x1xf32>
    %cst_6 = arith.constant 0.001953125 : f32
    %14 = vector.broadcast %cst_6 : f32 to vector<1x4x1xf32>
    %15 = arith.mulf %13, %14 : vector<1x4x1xf32>
    %c0_7 = arith.constant 0 : index
    %c0_8 = arith.constant 0 : index
    %c0_9 = arith.constant 0 : index
    %16 = vector.load %arg2[%c0_7, %c0_8, %c0_9] : memref<1x4x1xf32, #tpu.memory_space<vmem>>, vector<1x4x1xf32>
    %cst_10 = arith.constant 9.99999974E-6 : f32
    %17 = vector.broadcast %cst_10 : f32 to vector<1x4x1xf32>
    %18 = arith.addf %15, %17 : vector<1x4x1xf32>
    %19 = math.rsqrt %18 : vector<1x4x1xf32>
    %20 = arith.mulf %16, %19 : vector<1x4x1xf32>
    %21 = vector.broadcast %20 : vector<1x4x1xf32> to vector<2x4x256xf32>
    %22 = arith.mulf %8, %21 : vector<2x4x256xf32>
    %c0_11 = arith.constant 0 : index
    %c0_12 = arith.constant 0 : index
    %c0_13 = arith.constant 0 : index
    %23 = vector.load %arg3[%c0_11, %c0_12, %c0_13] : memref<1x4x1xf32, #tpu.memory_space<vmem>>, vector<1x4x1xf32>
    %24 = vector.broadcast %23 : vector<1x4x1xf32> to vector<2x4x256xf32>
    %25 = arith.addf %22, %24 : vector<2x4x256xf32>
    %c0_14 = arith.constant 0 : index
    %c0_15 = arith.constant 0 : index
    %c0_16 = arith.constant 0 : index
    %26 = vector.load %arg4[%c0_14, %c0_15, %c0_16] : memref<2x4x256xf32, #tpu.memory_space<vmem>>, vector<2x4x256xf32>
    tpu.vector_store %arg4[%c0_14, %c0_15, %c0_16], %25 {strides = array<i32>} : memref<2x4x256xf32, #tpu.memory_space<vmem>>, vector<2x4x256xf32>,
    %c0_17 = arith.constant 0 : index
    %c0_18 = arith.constant 0 : index
    %c0_19 = arith.constant 0 : index
    %27 = vector.load %arg5[%c0_17, %c0_18, %c0_19] : memref<1x4x1xf32, #tpu.memory_space<vmem>>, vector<1x4x1xf32>
    tpu.vector_store %arg5[%c0_17, %c0_18, %c0_19], %6 {strides = array<i32>} : memref<1x4x1xf32, #tpu.memory_space<vmem>>, vector<1x4x1xf32>,
    %c0_20 = arith.constant 0 : index
    %c0_21 = arith.constant 0 : index
    %c0_22 = arith.constant 0 : index
    %28 = vector.load %arg6[%c0_20, %c0_21, %c0_22] : memref<1x4x1xf32, #tpu.memory_space<vmem>>, vector<1x4x1xf32>
    tpu.vector_store %arg6[%c0_20, %c0_21, %c0_22], %15 {strides = array<i32>} : memref<1x4x1xf32, #tpu.memory_space<vmem>>, vector<1x4x1xf32>,
    return
  }
  func.func @transform_0(%arg0: i32) -> (i32, i32, i32) {
    %c0_i32 = arith.constant 0 : i32
    %c0_i32_0 = arith.constant 0 : i32
    %c0_i32_1 = arith.constant 0 : i32
    return %c0_i32, %arg0, %c0_i32_0 : i32, i32, i32
  }
  func.func @transform_1(%arg0: i32) -> (i32, i32, i32) {
    %c0_i32 = arith.constant 0 : i32
    %c0_i32_0 = arith.constant 0 : i32
    %c0_i32_1 = arith.constant 0 : i32
    return %c0_i32, %arg0, %c0_i32_0 : i32, i32, i32
  }
  func.func @transform_2(%arg0: i32) -> (i32, i32, i32) {
    %c0_i32 = arith.constant 0 : i32
    %c0_i32_0 = arith.constant 0 : i32
    %c0_i32_1 = arith.constant 0 : i32
    return %c0_i32, %arg0, %c0_i32_0 : i32, i32, i32
  }
  func.func @transform_3(%arg0: i32) -> (i32, i32, i32) {
    %c0_i32 = arith.constant 0 : i32
    %c0_i32_0 = arith.constant 0 : i32
    %c0_i32_1 = arith.constant 0 : i32
    return %c0_i32, %arg0, %c0_i32_0 : i32, i32, i32
  }
  func.func @transform_4(%arg0: i32) -> (i32, i32, i32) {
    %c0_i32 = arith.constant 0 : i32
    %c0_i32_0 = arith.constant 0 : i32
    %c0_i32_1 = arith.constant 0 : i32
    return %c0_i32, %arg0, %c0_i32_0 : i32, i32, i32
  }
  func.func @transform_5(%arg0: i32) -> (i32, i32, i32) {
    %c0_i32 = arith.constant 0 : i32
    %c0_i32_0 = arith.constant 0 : i32
    %c0_i32_1 = arith.constant 0 : i32
    return %c0_i32, %arg0, %c0_i32_0 : i32, i32, i32
  }
}

</mosaic_0001>

<bundles_post_ra>
// kernel: _batch_norm_impl.1
= control target key start
LH: loop header
LB: loop body
LE: loop exit
PB: predicated region body
PF: predicated region fallthrough
CT: control target
= control target key end

     0   :  { %vm25_vm0 = vcmask 1043456   ;;  %v131_v10 = vmov 839922192   ;;  %v44_v12 = vlaneseq  ;;  %vm108_vm1 = vcmask 3072   ;;  %s201_s0 = inlined_call_operand.vmem [shape: f32[2,4,256], index: 0, kind: input, shape index: {}]   ;;  %s202_s4 = inlined_call_operand.vmem [shape: f32[1,4,1], index: 4, kind: output, shape index: {1}]   ;;  %s203_s2 = inlined_call_operand.vmem [shape: f32[1,4,1], index: 2, kind: input, shape index: {}]   ;;  %s204_s5 = inlined_call_operand.vmem [shape: f32[1,4,1], index: 5, kind: output, shape index: {2}]   ;;  %s205_s1 = inlined_call_operand.vmem [shape: f32[1,4,1], index: 1, kind: input, shape index: {}]   ;;  %s206_s3 = inlined_call_operand.vmem [shape: f32[2,4,256], index: 3, kind: output, shape index: {0}]  }
   0x1   :  { %v17_v0 = vld [vmem:[%s201_s0] sm:$0xff]  ;;  %v18_v1 = vld [vmem:[%s201_s0 + $0x8] sm:$0xff]  ;;  %v42_v11 = vunpack.c.l.s4 %v131_v10  ;;  %v132_v35 = vmov 0  }
   0x2   :  { %v21_v2 = vcombine.high %v17_v0, %v17_v0  ;;  %v26_v3 = vsel %vm25_vm0, %v17_v0, 0.0  ;;  %v22_v4 = vcombine.high %v18_v1, %v18_v1  ;;  %v31_v6 = vsel %vm25_vm0, %v18_v1, 0.0  ;;  %125 = vset.pattern.permute.xlu0 %v132_v35  ;;  %126 = vset.pattern.permute.xlu1 %v132_v35  ;;  %v91_v36 = vld [vmem:[%s203_s2] sm:$0xf] }
   0x3   :  { %v43_v14 = vunpack.c.0.s8 %v42_v11  ;;  %v45_v15 = vshrl.u32 %v44_v12, 7  ;;  %v73_v44 = vld [vmem:[%s205_s1] sm:$0xf] }
   0x4   :  { %v27_v5 = vsel %vm25_vm0, %v21_v2, 0.0  ;;  %v32_v7 = vsel %vm25_vm0, %v22_v4, 0.0 }
   0x5   :  { %v28_v8 = vadd.f32 %v27_v5, %v26_v3  ;;  %v33_v9 = vadd.f32 %v32_v7, %v31_v6  ;;  %v46_v19 = vsub.s32 %v43_v14, %v45_v15 }
   0x7   :  { %29 = vadd.xlane.f32.xlu0 %v28_v8 }
   0xb   :  { %34 = vadd.xlane.f32.xlu0 %v33_v9 }
  0x94   :  { %v30_v13 = vpop.xlane.xlu0 %29 }
  0x95   :  { %v36_v17 = vsel %vm25_vm0, %v30_v13, 0.0 }
  0x98   :  { %v35_v16 = vpop.xlane.xlu0 %34 }
  0x99   :  { %v37_v18 = vsel %vm25_vm0, %v35_v16, 0.0 }
  0x9a   :  { %v38_v20 = vadd.f32 %v37_v18, %v36_v17 }
  0x9c   :  { %v39_v21 = vmul.f32 0.001953125, %v38_v20 }
  0x9e   :  { %v47_v22 = vrot.slane %v39_v21, %v46_v19  ;;  %109 = vst.msk [vmem:[%s202_s4] sm:$0xf] %vm108_vm1, %v39_v21 }
  0xa0   :  { %v50_v23 = vsub.f32 %v18_v1, %v47_v22  ;;  %v49_v24 = vsub.f32 %v17_v0, %v47_v22 }
  0xa2   :  { %v51_v25 = vmul.f32 %v49_v24, %v49_v24  ;;  %v52_v26 = vmul.f32 %v50_v23, %v50_v23 }
  0xa4   :  { %v55_v27 = vcombine.high %v51_v25, %v51_v25  ;;  %v56_v28 = vcombine.high %v52_v26, %v52_v26  ;;  %v59_v29 = vsel %vm25_vm0, %v51_v25, 0.0  ;;  %v64_v33 = vsel %vm25_vm0, %v52_v26, 0.0 }
  0xa6   :  { %v60_v30 = vsel %vm25_vm0, %v55_v27, 0.0  ;;  %v65_v32 = vsel %vm25_vm0, %v56_v28, 0.0 }
  0xa7   :  { %v61_v31 = vadd.f32 %v60_v30, %v59_v29  ;;  %v66_v34 = vadd.f32 %v65_v32, %v64_v33 }
  0xa9   :  { %62 = vadd.xlane.f32.xlu1 %v61_v31 }
  0xad   :  { %67 = vadd.xlane.f32.xlu1 %v66_v34 }
  0xbe   :  { %94 = vperm.xlu1 %126, %v91_v36  }
 0x136   :  { %v63_v37 = vpop.xlane.xlu1 %62 }
 0x137   :  { %v69_v39 = vsel %vm25_vm0, %v63_v37, 0.0 }
 0x13a   :  { %v68_v38 = vpop.xlane.xlu1 %67 }
 0x13b   :  { %v70_v40 = vsel %vm25_vm0, %v68_v38, 0.0 }
 0x13c   :  { %v71_v41 = vadd.f32 %v70_v40, %v69_v39 }
 0x13e   :  { %v72_v42 = vmul.f32 0.001953125, %v71_v41  ;;  %v95_v47 = vpop.permute.xlu1 %94 }
 0x13f   :  { %v102_v50 = vrot.slane %v95_v47, %v46_v19 }
 0x140   :  { %v74_v43 = vadd.f32 1e-05, %v72_v42  ;;  %110 = vst.msk [vmem:[%s204_s5] sm:$0xf] %vm108_vm1, %v72_v42 }
 0x142   :  { %129 = vrsqrt.f32 %v74_v43 }
 0x14c   :  { %v130_v45 = vpop.eup %129 }
 0x14d   :  { %v76_v46 = vmul.f32 %v130_v45, %v73_v44 }
 0x14f   :  { %79 = vperm.xlu0 %125, %v76_v46  }
 0x1ce   :  { %v80_v48 = vpop.permute.xlu0 %79 }
 0x1cf   :  { %v87_v49 = vrot.slane %v80_v48, %v46_v19 }
 0x1d1   :  { %v89_v51 = vmul.f32 %v87_v49, %v49_v24  ;;  %v90_v52 = vmul.f32 %v87_v49, %v50_v23 }
 0x1d3   :  { %v104_v53 = vadd.f32 %v102_v50, %v89_v51  ;;  %v105_v54 = vadd.f32 %v102_v50, %v90_v52 }
 0x1d5   :  { %106 = vst [vmem:[%s206_s3] sm:$0xff] %v104_v53  ;;  %107 = vst [vmem:[%s206_s3 + $0x8] sm:$0xff] %v105_v54 }

</bundles_post_ra>
